<compile_context>
chip_gen: v5e
topology: v5e:2x2
jax: 0.10.0
libtpu: 0.0.40
codegen_flags: <defaults>
</compile_context>

<pallas_src>
import functools

import jax
import jax.numpy as jnp
from jax.experimental import pallas as pl
from jax.experimental.pallas import tpu as pltpu


def _distill_loss_kernel(logits_ref, teacher_ref, labels_ref, out_ref,
                         *, inv_T, ce_scale, kl_scale):
    logits = logits_ref[...].astype(jnp.float32)    # (TILE_N, C)
    teacher = teacher_ref[...].astype(jnp.float32)  # (TILE_N, C)
    labels = labels_ref[...]                        # (TILE_N, 1) int32

    # Student log-softmax over classes (last dim / lanes).
    s_shift = logits - jnp.max(logits, axis=-1, keepdims=True)
    s_lse = jnp.log(jnp.sum(jnp.exp(s_shift), axis=-1, keepdims=True))
    s_logp = s_shift - s_lse                        # (TILE_N, C)

    # Teacher log-softmax at temperature T; reuse exp(t_shift) for the
    # probabilities so only two full-tile exp passes hit the EUP.
    t = teacher * inv_T
    t_shift = t - jnp.max(t, axis=-1, keepdims=True)
    e_t = jnp.exp(t_shift)
    sum_t = jnp.sum(e_t, axis=-1, keepdims=True)    # (TILE_N, 1)
    t_logp = t_shift - jnp.log(sum_t)               # (TILE_N, C)
    inv_sum_t = 1.0 / sum_t                         # per-row divide (cheap)
    p_t = e_t * inv_sum_t                           # teacher probs

    # Cross-entropy via iota mask (no gather); padded rows have label=-1 so
    # they never match and contribute zero.
    col_ids = jax.lax.broadcasted_iota(jnp.int32, s_logp.shape, 1)
    ce_elem = jnp.where(col_ids == labels, -s_logp, 0.0)

    # Fused CE + KL contribution, scale factors folded per element
    # (free VPU filler in the memory-bound regime); single reduction per tile.
    elem = ce_scale * ce_elem + kl_scale * (p_t * (t_logp - s_logp))
    partial = jnp.sum(elem)

    # Per-block partial written as a full (1, 8, 128) tile (tiling-legal,
    # lane-dense, negligible write traffic); wrapper reads [i, 0, 0].
    out_ref[...] = jnp.full(out_ref.shape, partial, dtype=jnp.float32)


def _pick_tile_n(n_rows, n_classes, budget_bytes=24 << 20):
    """Row-tile size so ~10 live f32 (TILE_N, C) slabs fit the VMEM budget
    (2 inputs x 2 pipeline buffers + ~6 softmax temporaries)."""
    per_row = 10 * n_classes * 4
    tile = max(8, budget_bytes // per_row)
    tile = min(tile, 512)
    tile = max(8, (tile // 8) * 8)                      # f32 sublane multiple
    tile = min(tile, ((n_rows + 7) // 8) * 8)           # don't exceed padded N
    return int(tile)


def feedback_with_remember_distillation_loss(logits, labels, teacher_logits,
                                             T=1.0, a=0.25):
    """logits/teacher_logits: (B, S, C) float, labels: (B, S) int."""
    B, S, C = logits.shape
    N = B * S

    tile_n = _pick_tile_n(N, C)
    n_blocks = (N + tile_n - 1) // tile_n
    n_pad = n_blocks * tile_n

    logits2d = logits.reshape(N, C)
    teacher2d = teacher_logits.reshape(N, C)
    labels2d = labels.reshape(N, 1).astype(jnp.int32)
    if n_pad != N:
        pad = n_pad - N
        # Zero-padded logit rows give t_logp == s_logp exactly -> KL term 0;
        # label -1 never matches the iota -> CE term 0.
        logits2d = jnp.pad(logits2d, ((0, pad), (0, 0)))
        teacher2d = jnp.pad(teacher2d, ((0, pad), (0, 0)))
        labels2d = jnp.pad(labels2d, ((0, pad), (0, 0)), constant_values=-1)

    kernel = functools.partial(
        _distill_loss_kernel,
        inv_T=1.0 / float(T),
        ce_scale=float(a) / float(N),          # CrossEntropy 'mean' over B*S
        kl_scale=(1.0 - float(a)) / float(B))  # KLDiv 'batchmean' (/ B)

    itemsize = jnp.dtype(logits2d.dtype).itemsize
    cost = pl.CostEstimate(
        flops=12 * n_pad * C,
        transcendentals=2 * n_pad * C,
        bytes_accessed=2 * n_pad * C * itemsize + n_pad * 4
                       + n_blocks * 8 * 128 * 4)

    partials = pl.pallas_call(
        kernel,
        out_shape=jax.ShapeDtypeStruct((n_blocks, 8, 128), jnp.float32),
        grid=(n_blocks,),
        in_specs=[
            pl.BlockSpec((tile_n, C), lambda i: (i, 0)),
            pl.BlockSpec((tile_n, C), lambda i: (i, 0)),
            pl.BlockSpec((tile_n, 1), lambda i: (i, 0)),
        ],
        out_specs=pl.BlockSpec((1, 8, 128), lambda i: (i, 0, 0)),
        compiler_params=pltpu.CompilerParams(
            dimension_semantics=("parallel",),
            vmem_limit_bytes=48 * 1024 * 1024),
        cost_estimate=cost,
    )(logits2d, teacher2d, labels2d)

    return jnp.sum(partials[:, 0, 0])


def _reference_loss(logits, labels, teacher_logits, T=1.0, a=0.25):
    """Pure-JAX reference mirroring the PyTorch module."""
    B, S, C = logits.shape
    t_logp = jax.nn.log_softmax(teacher_logits / T, axis=-1)
    s_logp = jax.nn.log_softmax(logits, axis=-1)
    one_hot = jax.nn.one_hot(labels, C, dtype=jnp.float32)
    first = -jnp.mean(jnp.sum(one_hot * s_logp, axis=-1))
    second = jnp.sum(jnp.exp(t_logp) * (t_logp - s_logp)) / B
    return a * first + (1 - a) * second


if __name__ == "__main__":
    B, S, C = 2, 8, 32
    key = jax.random.PRNGKey(0)
    k1, k2, k3 = jax.random.split(key, 3)
    logits = jax.random.normal(k1, (B, S, C), dtype=jnp.float32)
    teacher_logits = jax.random.normal(k2, (B, S, C), dtype=jnp.float32)
    labels = jax.random.randint(k3, (B, S), 0, C, dtype=jnp.int32)

    loss = feedback_with_remember_distillation_loss(
        logits, labels, teacher_logits, T=1.0, a=0.25)
    loss = jax.block_until_ready(loss)

    ref = _reference_loss(logits, labels, teacher_logits, T=1.0, a=0.25)
    assert jnp.allclose(loss, ref, rtol=1e-5, atol=1e-5), (loss, ref)

    print("KERNEL_OK")
</pallas_src>

<mosaic_0001>
module attributes {stable_mosaic.version = 11 : i64} {
  func.func @_distill_loss_kernel(%arg0: i32, %arg1: memref<16x32xf32, #tpu.memory_space<vmem>>, %arg2: memref<16x32xf32, #tpu.memory_space<vmem>>, %arg3: memref<16x1xi32, #tpu.memory_space<vmem>>, %arg4: memref<1x8x128xf32, #tpu.memory_space<vmem>>) attributes {dimension_semantics = [#tpu.dimension_semantics<parallel>], iteration_bounds = array<i64: 1>, scalar_prefetch = 0 : i64, scratch_operands = 0 : i64, tpu.core_type = #tpu.core_type<tc>, window_params = [{transform_indices = @transform_0, window_bounds = array<i64: 16, 32>}, {transform_indices = @transform_1, window_bounds = array<i64: 16, 32>}, {transform_indices = @transform_2, window_bounds = array<i64: 16, 1>}, {transform_indices = @transform_3, window_bounds = array<i64: 1, 8, 128>}]} {
    %c0 = arith.constant 0 : index
    %c0_0 = arith.constant 0 : index
    %0 = vector.load %arg1[%c0, %c0_0] : memref<16x32xf32, #tpu.memory_space<vmem>>, vector<16x32xf32>
    %c0_1 = arith.constant 0 : index
    %c0_2 = arith.constant 0 : index
    %1 = vector.load %arg2[%c0_1, %c0_2] : memref<16x32xf32, #tpu.memory_space<vmem>>, vector<16x32xf32>
    %c0_3 = arith.constant 0 : index
    %c0_4 = arith.constant 0 : index
    %2 = vector.load %arg3[%c0_3, %c0_4] : memref<16x1xi32, #tpu.memory_space<vmem>>, vector<16x1xi32>
    %cst = arith.constant dense<0xFF800000> : vector<16xf32>
    %3 = vector.multi_reduction <maximumf>, %0, %cst [1] : vector<16x32xf32> to vector<16xf32>
    %4 = vector.shape_cast %3 : vector<16xf32> to vector<16x1xf32>
    %5 = vector.broadcast %4 : vector<16x1xf32> to vector<16x32xf32>
    %6 = arith.subf %0, %5 : vector<16x32xf32>
    %7 = math.exp %6 : vector<16x32xf32>
    %cst_5 = arith.constant dense<0.000000e+00> : vector<16xf32>
    %8 = vector.multi_reduction <add>, %7, %cst_5 [1] : vector<16x32xf32> to vector<16xf32>
    %9 = vector.shape_cast %8 : vector<16xf32> to vector<16x1xf32>
    %10 = math.log %9 : vector<16x1xf32>
    %11 = vector.broadcast %10 : vector<16x1xf32> to vector<16x32xf32>
    %12 = arith.subf %6, %11 : vector<16x32xf32>
    %cst_6 = arith.constant 1.000000e+00 : f32
    %13 = vector.broadcast %cst_6 : f32 to vector<16x32xf32>
    %14 = arith.mulf %1, %13 : vector<16x32xf32>
    %cst_7 = arith.constant dense<0xFF800000> : vector<16xf32>
    %15 = vector.multi_reduction <maximumf>, %14, %cst_7 [1] : vector<16x32xf32> to vector<16xf32>
    %16 = vector.shape_cast %15 : vector<16xf32> to vector<16x1xf32>
    %17 = vector.broadcast %16 : vector<16x1xf32> to vector<16x32xf32>
    %18 = arith.subf %14, %17 : vector<16x32xf32>
    %19 = math.exp %18 : vector<16x32xf32>
    %cst_8 = arith.constant dense<0.000000e+00> : vector<16xf32>
    %20 = vector.multi_reduction <add>, %19, %cst_8 [1] : vector<16x32xf32> to vector<16xf32>
    %21 = vector.shape_cast %20 : vector<16xf32> to vector<16x1xf32>
    %22 = math.log %21 : vector<16x1xf32>
    %23 = vector.broadcast %22 : vector<16x1xf32> to vector<16x32xf32>
    %24 = arith.subf %18, %23 : vector<16x32xf32>
    %cst_9 = arith.constant 1.000000e+00 : f32
    %25 = vector.broadcast %cst_9 : f32 to vector<16x1xf32>
    %26 = arith.divf %25, %21 : vector<16x1xf32>
    %27 = vector.broadcast %26 : vector<16x1xf32> to vector<16x32xf32>
    %28 = arith.mulf %19, %27 : vector<16x32xf32>
    %29 = tpu.iota {dimensions = array<i32: 1>} : vector<16x32xi32>
    %30 = vector.broadcast %2 : vector<16x1xi32> to vector<16x32xi32>
    %31 = arith.cmpi eq, %29, %30 : vector<16x32xi32>
    %cst_10 = arith.constant 0.000000e+00 : f32
    %32 = vector.broadcast %cst_10 : f32 to vector<16x32xf32>
    %33 = arith.subf %32, %12 : vector<16x32xf32>
    %cst_11 = arith.constant 0.000000e+00 : f32
    %34 = vector.broadcast %cst_11 : f32 to vector<16x32xf32>
    %35 = arith.select %31, %33, %34 : vector<16x32xi1>, vector<16x32xf32>
    %cst_12 = arith.constant 1.562500e-02 : f32
    %36 = vector.broadcast %cst_12 : f32 to vector<16x32xf32>
    %37 = arith.mulf %36, %35 : vector<16x32xf32>
    %38 = arith.subf %24, %12 : vector<16x32xf32>
    %39 = arith.mulf %28, %38 : vector<16x32xf32>
    %cst_13 = arith.constant 3.750000e-01 : f32
    %40 = vector.broadcast %cst_13 : f32 to vector<16x32xf32>
    %41 = arith.mulf %40, %39 : vector<16x32xf32>
    %42 = arith.addf %37, %41 : vector<16x32xf32>
    %43 = vector.shape_cast %42 : vector<16x32xf32> to vector<1x16x32xf32>
    %cst_14 = arith.constant dense<0.000000e+00> : vector<1xf32>
    %44 = vector.multi_reduction <add>, %43, %cst_14 [1, 2] : vector<1x16x32xf32> to vector<1xf32>
    %45 = vector.shape_cast %44 : vector<1xf32> to vector<1x1x1xf32>
    %46 = vector.extract %45[0, 0, 0] : f32 from vector<1x1x1xf32>
    %47 = vector.broadcast %46 : f32 to vector<1x8x128xf32>
    %c0_15 = arith.constant 0 : index
    %c0_16 = arith.constant 0 : index
    %c0_17 = arith.constant 0 : index
    %48 = vector.load %arg4[%c0_15, %c0_16, %c0_17] : memref<1x8x128xf32, #tpu.memory_space<vmem>>, vector<1x8x128xf32>
    tpu.vector_store %arg4[%c0_15, %c0_16, %c0_17], %47 {strides = array<i32>} : memref<1x8x128xf32, #tpu.memory_space<vmem>>, vector<1x8x128xf32>,
    return
  }
  func.func @transform_0(%arg0: i32) -> (i32, i32) {
    %c0_i32 = arith.constant 0 : i32
    %c0_i32_0 = arith.constant 0 : i32
    return %arg0, %c0_i32 : i32, i32
  }
  func.func @transform_1(%arg0: i32) -> (i32, i32) {
    %c0_i32 = arith.constant 0 : i32
    %c0_i32_0 = arith.constant 0 : i32
    return %arg0, %c0_i32 : i32, i32
  }
  func.func @transform_2(%arg0: i32) -> (i32, i32) {
    %c0_i32 = arith.constant 0 : i32
    %c0_i32_0 = arith.constant 0 : i32
    return %arg0, %c0_i32 : i32, i32
  }
  func.func @transform_3(%arg0: i32) -> (i32, i32, i32) {
    %c0_i32 = arith.constant 0 : i32
    %c0_i32_0 = arith.constant 0 : i32
    %c0_i32_1 = arith.constant 0 : i32
    return %arg0, %c0_i32, %c0_i32_0 : i32, i32, i32
  }
}

</mosaic_0001>

<bundles_post_ra>
// kernel: tpu_custom_call.1
= control target key start
LH: loop header
LB: loop body
LE: loop exit
PB: predicated region body
PF: predicated region fallthrough
CT: control target
= control target key end

     0   :  { %8 = vsyncpa [#allocation3], 0  ;;  %s319_s0 = inlined_call_operand.vmem [shape: f32[16,32], index: 0, kind: input, shape index: {}]   ;;  %s320_s1 = inlined_call_operand.hbm [shape: f32[16,32], index: 1, kind: input, shape index: {}]   ;;  %s321_s2 = inlined_call_operand.vmem [shape: s32[16,1], index: 2, kind: input, shape index: {}]   ;;  %s322_s3 = inlined_call_operand.hbm [shape: f32[1,8,128], index: 3, kind: output, shape index: {}]  }
   0x1   :  { %9 = vsyncpa [#allocation4], 0  ;;  %s16_s14 = sshll.u32 %s320_s1, 4  ;;  %s254_s15 = smov [#allocation2]   ;;  %s17_s14 = int_to_ptr.hbm [resolvable:$true] %s16_s14 }
   0x2   :  { %s18_s16 = sshll.u32 %s254_s15, 4  ;;  %s255_s17 = smov 128   ;;  %s19_s16 = int_to_ptr.vmem [resolvable:$true] %s18_s16 }
   0x3   :  { %s256_s18 = smov 8  }
   0x4   :  { %24 = dma.hbm_to_vmem [thread:$0]  %s17_s14, 256, %s19_s16, [#allocation3], %s255_s17, %s255_s17, %s256_s18  }
   0x5   :  { %250 = dma.done.wait [#allocation3], 256  }
   0x6   :  { %251 = vsyncadd [#allocation3], 4294967040  ;;  %vm37_vm0 = vcmask 261120   ;;  %v33_v0 = vld [vmem:[#allocation2] sm:$0xff]  ;;  %v34_v4 = vld [vmem:[#allocation2 + $0x8] sm:$0xff]  ;;  %v257_v8 = vmov 0   ;;  %v118_v47 = vlaneseq }
   0x7   :  { %v31_v1 = vld [vmem:[%s319_s0] sm:$0xff]  ;;  %v62_v2 = vsel %vm37_vm0, %v33_v0, -inf  ;;  %v32_v5 = vld [vmem:[%s319_s0 + $0x8] sm:$0xff]  ;;  %v65_v6 = vsel %vm37_vm0, %v34_v4, -inf  ;;  %181 = vset.pattern.permute.xlu0 %v257_v8  ;;  %180 = vset.pattern.permute.xlu2 %v257_v8  ;;  %s163_s28 = sshll.u32 %s322_s3, 4  ;;  %s164_s28 = int_to_ptr.hbm [resolvable:$true] %s163_s28 }
   0x8   :  { %v38_v3 = vsel %vm37_vm0, %v31_v1, -inf  ;;  %63 = vmax.xlane.f32.xlu0 %v62_v2  ;;  %v41_v7 = vsel %vm37_vm0, %v32_v5, -inf  ;;  %v36_v29 = vld [vmem:[%s321_s2 + $0x8] sm:$0xff]  ;;  %v35_v30 = vld [vmem:[%s321_s2] sm:$0xff]  ;;  %v119_v60 = vand.u32 127, %v118_v47  ;;  %s258_s2 = smov [#allocation5]  }
   0x9   :  { %39 = vmax.xlane.f32.xlu1 %v38_v3  ;;  %s161_s25 = sshll.u32 %s258_s2, 4  ;;  %s162_s25 = int_to_ptr.vmem [resolvable:$true] %s161_s25 }
  0x10   :  { %66 = vmax.xlane.f32.xlu0 %v65_v6 }
  0x11   :  { %42 = vmax.xlane.f32.xlu1 %v41_v7 }
  0x7b   :  { %v64_v9 = vpop.xlane.xlu0 %63 }
  0x7c   :  { %v40_v10 = vpop.xlane.xlu1 %39  ;;  %v292_v11 = vsub.f32 %v33_v0, %v64_v9 }
  0x7d   :  { %v44_v12 = vsub.f32 %v31_v1, %v40_v10 }
  0x7e   :  { %v70_v13 = vmul.f32 1.442695, %v292_v11 }
  0x7f   :  { %v46_v14 = vmul.f32 1.442695, %v44_v12 }
  0x80   :  { %182 = vpow2.f32 %v70_v13 }
  0x81   :  { %184 = vpow2.f32 %v46_v14 }
  0x83   :  { %v67_v15 = vpop.xlane.xlu0 %66 }
  0x84   :  { %v43_v16 = vpop.xlane.xlu1 %42  ;;  %v295_v17 = vsub.f32 %v34_v4, %v67_v15 }
  0x85   :  { %v45_v18 = vsub.f32 %v32_v5, %v43_v16 }
  0x86   :  { %v183_v19 = vpop.eup %182  ;;  %v72_v20 = vmul.f32 1.442695, %v295_v17 }
  0x87   :  { %v48_v21 = vmul.f32 1.442695, %v45_v18  ;;  %v185_v22 = vpop.eup %184  ;;  %v74_v23 = vsel %vm37_vm0, %v183_v19, 0.0 }
  0x88   :  { %186 = vpow2.f32 %v72_v20  ;;  %75 = vadd.xlane.f32.xlu2 %v74_v23  ;;  %v50_v24 = vsel %vm37_vm0, %v185_v22, 0.0 }
  0x89   :  { %188 = vpow2.f32 %v48_v21  ;;  %51 = vadd.xlane.f32.xlu0 %v50_v24 }
  0x8e   :  { %v300_v25 = vpop.eup %186 }
  0x8f   :  { %v189_v26 = vpop.eup %188  ;;  %v77_v27 = vsel %vm37_vm0, %v300_v25, 0.0 }
  0x90   :  { %78 = vadd.xlane.f32.xlu2 %v77_v27  ;;  %v53_v28 = vsel %vm37_vm0, %v189_v26, 0.0 }
  0x91   :  { %54 = vadd.xlane.f32.xlu1 %v53_v28 }
  0x9d   :  { %124 = vperm.xlu0 %181, %v36_v29  }
  0xa8   :  { %121 = vperm.xlu2 %180, %v35_v30  }
  0xfb   :  { %v76_v31 = vpop.xlane.xlu2 %75 }
  0xfc   :  { %v52_v32 = vpop.xlane.xlu0 %51  ;;  %190 = vrcp.f32 %v76_v31  ;;  %v95_v40 = vand.u32 2147483647, %v76_v31  ;;  %v97_v41 = vand.u32 2147483648, %v76_v31  ;;  %vm91_vm2 = vweird.f32 %v76_v31 }
  0xfd   :  { %192 = vlog2.f32 %v76_v31 }
  0xfe   :  { %194 = vlog2.f32 %v52_v32  ;;  %v98_v49 = vor.u32 1.1754944e-38, %v97_v41  ;;  %vm96_vm4 = vcmp.eq.f32.partialorder %v95_v40, 8.507059e+37 }
 0x102   :  { %v191_v33 = vpop.eup %190 }
 0x103   :  { %v79_v34 = vpop.xlane.xlu2 %78  ;;  %v193_v35 = vpop.eup %192  ;;  %v87_v36 = vmul.f32 %v191_v33, %v76_v31  ;;  %vm92_vm1 = vweird.f32 %v191_v33 }
 0x104   :  { %196 = vlog2.f32 %v79_v34  ;;  %v55_v37 = vpop.xlane.xlu1 %54  ;;  %v195_v38 = vpop.eup %194  ;;  %v81_v43 = vmul.f32 0.6931472, %v193_v35  ;;  %vm93_vm3 = vmor %vm91_vm2, %vm92_vm1  ;;  %v112_v61 = vand.u32 2147483648, %v79_v34  ;;  %v110_v2 = vand.u32 2147483647, %v79_v34 }
 0x105   :  { %198 = vrcp.f32 %v79_v34  ;;  %v88_v39 = vsub.f32 1.0, %v87_v36  ;;  %v57_v44 = vmul.f32 0.6931472, %v195_v38  ;;  %vm106_vm6 = vweird.f32 %v79_v34 }
 0x106   :  { %200 = vlog2.f32 %v55_v37  ;;  %v84_v51 = vsub.f32 %v292_v11, %v81_v43  ;;  %v113_v7 = vor.u32 1.1754944e-38, %v112_v61  ;;  %vm111_vm9 = vcmp.eq.f32.partialorder %v110_v2, 8.507059e+37 }
 0x107   :  { %v89_v42 = vmul.f32 %v191_v33, %v88_v39  ;;  %v60_v52 = vsub.f32 %v44_v12, %v57_v44 }
 0x109   :  { %v90_v46 = vadd.f32 %v191_v33, %v89_v42  ;;  %v134_v0 = vsub.f32 %v84_v51, %v60_v52  ;;  %v128_v8 = vsub.f32 0.0, %v60_v52 }
 0x10a   :  { %v197_v45 = vpop.eup %196 }
 0x10b   :  { %v199_v48 = vpop.eup %198  ;;  %v94_v54 = vsel %vm93_vm3, %v191_v33, %v90_v46  ;;  %v83_v58 = vmul.f32 0.6931472, %v197_v45  ;;  %v122_v63 = vpop.permute.xlu2 %121 }
 0x10c   :  { %v201_v50 = vpop.eup %200  ;;  %v102_v53 = vmul.f32 %v199_v48, %v79_v34  ;;  %v99_v56 = vsel %vm96_vm4, %v98_v49, %v94_v54  ;;  %vm107_vm5 = vweird.f32 %v199_v48  ;;  %vm126_vm7 = vcmp.eq.s32.totalorder %v119_v60, %v122_v63 }
 0x10d   :  { %v59_v55 = vmul.f32 0.6931472, %v201_v50  ;;  %v116_v59 = vmul.f32 %v183_v19, %v99_v56  ;;  %v85_v4 = vsub.f32 %v295_v17, %v83_v58  ;;  %vm108_vm8 = vmor %vm106_vm6, %vm107_vm5  ;;  %v130_v11 = vsel %vm126_vm7, %v128_v8, 0.0 }
 0x10e   :  { %v103_v57 = vsub.f32 1.0, %v102_v53 }
 0x10f   :  { %v61_v62 = vsub.f32 %v45_v18, %v59_v55  ;;  %v125_v3 = vpop.permute.xlu0 %124  ;;  %v136_v5 = vmul.f32 %v134_v0, %v116_v59  ;;  %v132_v18 = vmul.f32 0.015625, %v130_v11 }
 0x110   :  { %v104_v1 = vmul.f32 %v199_v48, %v103_v57  ;;  %vm127_vm10 = vcmp.eq.s32.totalorder %v119_v60, %v125_v3 }
 0x111   :  { %v129_v9 = vsub.f32 0.0, %v61_v62  ;;  %v135_v13 = vsub.f32 %v85_v4, %v61_v62  ;;  %v138_v14 = vmul.f32 0.375, %v136_v5 }
 0x112   :  { %v105_v6 = vadd.f32 %v199_v48, %v104_v1 }
 0x113   :  { %v131_v16 = vsel %vm127_vm10, %v129_v9, 0.0  ;;  %v140_v17 = vadd.f32 %v138_v14, %v132_v18 }
 0x114   :  { %v109_v10 = vsel %vm108_vm8, %v199_v48, %v105_v6  ;;  %v133_v20 = vmul.f32 0.015625, %v131_v16 }
 0x115   :  { %v114_v12 = vsel %vm111_vm9, %v113_v7, %v109_v10  ;;  %v142_v23 = vsel %vm37_vm0, %v140_v17, 0.0 }
 0x116   :  { %v117_v15 = vmul.f32 %v300_v25, %v114_v12 }
 0x118   :  { %v137_v19 = vmul.f32 %v135_v13, %v117_v15 }
 0x11a   :  { %v139_v21 = vmul.f32 0.375, %v137_v19 }
 0x11c   :  { %v141_v22 = vadd.f32 %v139_v21, %v133_v20 }
 0x11e   :  { %v143_v24 = vsel %vm37_vm0, %v141_v22, 0.0 }
 0x11f   :  { %v144_v26 = vadd.f32 %v143_v24, %v142_v23 }
 0x121   :  { %145 = vadd.xlane.f32.xlu1 %v144_v26 }
 0x194   :  { %v146_v27 = vpop.xlane.xlu1 %145 }
 0x195   :  { %v147_v28 = vrot.slane %v146_v27, 4 }
 0x197   :  { %v148_v29 = vadd.f32 %v147_v28, %v146_v27 }
 0x199   :  { %v149_v30 = vrot.slane %v148_v29, 2 }
 0x19b   :  { %v150_v31 = vadd.f32 %v149_v30, %v148_v29 }
 0x19d   :  { %v151_v32 = vrot.slane %v150_v31, 1 }
 0x19f   :  { %v152_v25 = vadd.f32 %v151_v32, %v150_v31 }
 0x1a1   :  { %173 = vpush %v152_v25 }
 0x1d2   :  { %s174_s29 = spop %173 }
 0x1d3   :  { %v154_v33 = vstv %s174_s29 }
 0x1d4   :  { %155 = vst [vmem:[#allocation5] sm:$0xff] %v154_v33 }
 0x1d5   :  { %166 = dma.vmem_to_hbm [thread:$0]  %s162_s25, 128, %s164_s28, [#allocation4]  }
 0x1d6   :  { %252 = dma.done.wait [#allocation4], 128  }
 0x1d7   :  { %253 = vsyncadd [#allocation4], 4294967168 }
 0x1d8   :  { %171 = vsyncpa [#allocation3], 1 }
 0x1d9   :  { %172 = vsyncpa [#allocation4], 1 }

</bundles_post_ra>
